<compile_context>
chip_gen: v6e
topology: v6e:2x2x1
jax: 0.10.0
libtpu: 0.0.40
codegen_flags: <defaults>
</compile_context>

<pallas_src>
import functools

import jax
import jax.numpy as jnp
from jax.experimental import pallas as pl
from jax.experimental.pallas import tpu as pltpu


def _collapse_loss_kernel(x_ref, y_ref, partial_ref, *, tb, total_rows, need_mask):
    """One grid step: (tb, D) tile of rows -> one partial sum of exp(-||x-y||)."""
    xf = x_ref[...].astype(jnp.float32)
    yf = y_ref[...].astype(jnp.float32)
    diff = xf - yf
    # Reduce over the feature dim (lane axis) -> (tb, 1).
    sq_sum = jnp.sum(diff * diff, axis=1, keepdims=True)
    loss = jnp.exp(-jnp.sqrt(sq_sum))                      # (tb, 1)

    if need_mask:
        # Last tile may hang off the end of the batch: zero out padded rows
        # (garbage rows may yield inf/NaN, but jnp.where selects 0 for them).
        i = pl.program_id(0)
        row = i * tb + jax.lax.broadcasted_iota(jnp.int32, (tb, 1), 0)
        loss = jnp.where(row < total_rows, loss, 0.0)

    partial_ref[...] = jnp.sum(loss).reshape(1, 1)         # per-tile partial sum


def collapse_loss(x, y, *, tb=None):
    """Pallas implementation of CollapseLoss.forward for 2-D inputs (B, D)."""
    assert x.shape == y.shape, "x and y must have the same shape"
    assert x.ndim == 2, "expects (batch, features) inputs"
    B, D = x.shape

    itemsize = max(jnp.dtype(x.dtype).itemsize, jnp.dtype(y.dtype).itemsize)

    if tb is None:
        # 2 inputs x 2 pipeline buffers x tb x D x itemsize <= ~24 MiB: large
        # enough to be HBM-bandwidth bound, safely under v7x's 64 MiB VMEM.
        vmem_input_budget = 24 * 1024 * 1024
        max_tb = max(32, vmem_input_budget // (2 * 2 * D * itemsize))
        tb = min(2048, max_tb)

    if tb >= B:
        tb = B                                   # one tile covers the whole batch
    else:
        tb = max(32, (tb // 32) * 32)            # sublane-tiling friendly for any dtype

    num_tiles = pl.cdiv(B, tb)
    need_mask = (B % tb) != 0

    # Double-buffered input blocks + headroom for f32 intermediates.
    in_buf_bytes = 2 * 2 * tb * D * itemsize
    vmem_limit = int(min(48 * 1024 * 1024,
                         max(32 * 1024 * 1024, in_buf_bytes * 2.5)))

    partials = pl.pallas_call(
        functools.partial(_collapse_loss_kernel, tb=tb, total_rows=B,
                          need_mask=need_mask),
        out_shape=jax.ShapeDtypeStruct((num_tiles, 1), jnp.float32),
        grid_spec=pltpu.PrefetchScalarGridSpec(
            num_scalar_prefetch=0,
            grid=(num_tiles,),
            in_specs=[
                pl.BlockSpec((tb, D), lambda i: (i, 0)),
                pl.BlockSpec((tb, D), lambda i: (i, 0)),
            ],
            out_specs=pl.BlockSpec((1, 1), lambda i: (i, 0)),
        ),
        compiler_params=pltpu.CompilerParams(
            dimension_semantics=("parallel",),   # independent tiles -> megacore OK
            vmem_limit_bytes=vmem_limit,
        ),
    )(x, y)

    # Tiny finalization: mean over all rows.
    return jnp.sum(partials) / jnp.float32(B)


def collapse_loss_ref(x, y):
    """Pure-JAX reference, mirrors the PyTorch forward exactly."""
    diff = x.astype(jnp.float32) - y.astype(jnp.float32)
    root_norm = jnp.sqrt(jnp.sum(diff * diff, axis=1))
    return jnp.mean(jnp.exp(-root_norm))


if __name__ == "__main__":
    key = jax.random.PRNGKey(0)
    kx, ky = jax.random.split(key)

    # Case 1: small even batch -> single full-batch tile, grid = 1.
    B, D = 16, 128
    x = jax.random.normal(kx, (B, D), dtype=jnp.float32)
    y = jax.random.normal(ky, (B, D), dtype=jnp.float32)
    out = jax.block_until_ready(collapse_loss(x, y))
    ref = collapse_loss_ref(x, y)
    assert jnp.allclose(out, ref, rtol=1e-5, atol=1e-6), (out, ref)

    # Case 2: ragged batch with an explicit small tile -> multiple grid tiles
    # plus a masked remainder (exercises the cdiv grid + row mask path).
    B2, D2 = 40, 128
    x2 = jax.random.normal(kx, (B2, D2), dtype=jnp.float32)
    y2 = jax.random.normal(ky, (B2, D2), dtype=jnp.float32)
    out2 = jax.block_until_ready(collapse_loss(x2, y2, tb=32))
    ref2 = collapse_loss_ref(x2, y2)
    assert jnp.allclose(out2, ref2, rtol=1e-5, atol=1e-6), (out2, ref2)

    # Case 3: bf16 inputs, upcast to f32 inside the kernel.
    x3 = x2.astype(jnp.bfloat16)
    y3 = y2.astype(jnp.bfloat16)
    out3 = jax.block_until_ready(collapse_loss(x3, y3, tb=32))
    ref3 = collapse_loss_ref(x3, y3)
    assert jnp.allclose(out3, ref3, rtol=1e-2, atol=1e-3), (out3, ref3)

    print("KERNEL_OK")
</pallas_src>

<mosaic_0001>
module attributes {stable_mosaic.version = 11 : i64} {
  func.func @_collapse_loss_kernel(%arg0: i32, %arg1: memref<16x128xf32, #tpu.memory_space<vmem>>, %arg2: memref<16x128xf32, #tpu.memory_space<vmem>>, %arg3: memref<1x1xf32, #tpu.memory_space<vmem>>) attributes {dimension_semantics = [#tpu.dimension_semantics<parallel>], iteration_bounds = array<i64: 1>, scalar_prefetch = 0 : i64, scratch_operands = 0 : i64, tpu.core_type = #tpu.core_type<tc>, window_params = [{transform_indices = @transform_0, window_bounds = array<i64: 16, 128>}, {transform_indices = @transform_1, window_bounds = array<i64: 16, 128>}, {transform_indices = @transform_2, window_bounds = array<i64: 1, 1>}]} {
    %c0 = arith.constant 0 : index
    %c0_0 = arith.constant 0 : index
    %0 = vector.load %arg1[%c0, %c0_0] : memref<16x128xf32, #tpu.memory_space<vmem>>, vector<16x128xf32>
    %c0_1 = arith.constant 0 : index
    %c0_2 = arith.constant 0 : index
    %1 = vector.load %arg2[%c0_1, %c0_2] : memref<16x128xf32, #tpu.memory_space<vmem>>, vector<16x128xf32>
    %2 = arith.subf %0, %1 : vector<16x128xf32>
    %3 = arith.mulf %2, %2 : vector<16x128xf32>
    %cst = arith.constant dense<0.000000e+00> : vector<16xf32>
    %4 = vector.multi_reduction <add>, %3, %cst [1] : vector<16x128xf32> to vector<16xf32>
    %5 = vector.shape_cast %4 : vector<16xf32> to vector<16x1xf32>
    %6 = math.sqrt %5 : vector<16x1xf32>
    %cst_3 = arith.constant 0.000000e+00 : f32
    %7 = vector.broadcast %cst_3 : f32 to vector<16x1xf32>
    %8 = arith.subf %7, %6 : vector<16x1xf32>
    %9 = math.exp %8 : vector<16x1xf32>
    %10 = vector.shape_cast %9 : vector<16x1xf32> to vector<1x16x1xf32>
    %cst_4 = arith.constant dense<0.000000e+00> : vector<1xf32>
    %11 = vector.multi_reduction <add>, %10, %cst_4 [1, 2] : vector<1x16x1xf32> to vector<1xf32>
    %12 = vector.shape_cast %11 : vector<1xf32> to vector<1x1x1xf32>
    %13 = vector.extract %12[0, 0, 0] : f32 from vector<1x1x1xf32>
    %14 = vector.broadcast %13 : f32 to vector<1x1xf32>
    %c0_5 = arith.constant 0 : index
    %c0_6 = arith.constant 0 : index
    %15 = vector.load %arg3[%c0_5, %c0_6] : memref<1x1xf32, #tpu.memory_space<vmem>>, vector<1x1xf32>
    tpu.vector_store %arg3[%c0_5, %c0_6], %14 {strides = array<i32>} : memref<1x1xf32, #tpu.memory_space<vmem>>, vector<1x1xf32>,
    return
  }
  func.func @transform_0(%arg0: i32) -> (i32, i32) {
    %c0_i32 = arith.constant 0 : i32
    %c0_i32_0 = arith.constant 0 : i32
    return %arg0, %c0_i32 : i32, i32
  }
  func.func @transform_1(%arg0: i32) -> (i32, i32) {
    %c0_i32 = arith.constant 0 : i32
    %c0_i32_0 = arith.constant 0 : i32
    return %arg0, %c0_i32 : i32, i32
  }
  func.func @transform_2(%arg0: i32) -> (i32, i32) {
    %c0_i32 = arith.constant 0 : i32
    %c0_i32_0 = arith.constant 0 : i32
    return %arg0, %c0_i32 : i32, i32
  }
}

</mosaic_0001>

<bundles_post_ra>
// kernel: tpu_custom_call.1
= control target key start
LH: loop header
LB: loop body
LE: loop exit
PB: predicated region body
PF: predicated region fallthrough
CT: control target
= control target key end

     0   :  { %7 = vsyncpa [#allocation3], 0  ;;  %s214_s0 = inlined_call_operand.hbm [shape: f32[16,128], index: 0, kind: input, shape index: {}]   ;;  %s215_s1 = inlined_call_operand.hbm [shape: f32[16,128], index: 1, kind: input, shape index: {}]   ;;  %s216_s2 = inlined_call_operand.hbm [shape: f32[1,1], index: 2, kind: output, shape index: {}]  }
   0x1   :  { %8 = vsyncpa [#allocation6], 0 }
   0x2   :  { %9 = vsyncpa [#allocation4], 0  ;;  %s185_s9 = smov [#allocation2]  }
   0x3   :  { %s15_s10 = sshll.u32 %s185_s9, 4  ;;  %s16_s10 = int_to_ptr.vmem [resolvable:$true] %s15_s10 }
   0x4   :  { %s127_s11 = scalar_lea.vmem %s16_s10, 256  ;;  %p132_p1 = scmp.lt.s32.totalorder %s16_s10, %s16_s10 }
   0x5   :  { %p128_p0 = scmp.ne.s32.totalorder %s16_s10, %s127_s11  ;;  %p133_p2 = scmp.lt.s32.totalorder %s127_s11, %s127_s11 }
   0x7   :  { %p134_p3 = por %p133_p2, %p132_p1 }
   0x9   :  { %p135_p4 = pnand %p134_p3, %p128_p0 }
   0xb   :  { %138 = shalt.err (!%p135_p4)
}
   0xc   :  { %s186_s12 = smov 128   ;;  %s187_s13 = smov 8  }
   0xd   :  { %21 = dma.hbm_to_vmem [thread:$0]  %s214_s0, 256, %s16_s10, [#allocation3], %s186_s12, %s186_s12, %s187_s13  }
   0xe   :  { %s188_s16 = smov [#allocation5]  }
   0xf   :  { %s27_s17 = sshll.u32 %s188_s16, 4  ;;  %s28_s17 = int_to_ptr.vmem [resolvable:$true] %s27_s17 }
  0x10   :  { %s147_s18 = scalar_lea.vmem %s28_s17, 256  ;;  %p152_p6 = scmp.lt.s32.totalorder %s28_s17, %s28_s17 }
  0x11   :  { %p148_p5 = scmp.ne.s32.totalorder %s28_s17, %s147_s18  ;;  %p153_p7 = scmp.lt.s32.totalorder %s147_s18, %s147_s18 }
  0x13   :  { %p154_p8 = por %p153_p7, %p152_p6 }
  0x15   :  { %p155_p9 = pnand %p154_p8, %p148_p5 }
  0x17   :  { %158 = shalt.err (!%p155_p9)
}
  0x18   :  { %33 = dma.hbm_to_vmem [thread:$0]  %s215_s1, 256, %s28_s17, [#allocation6], %s186_s12, %s186_s12, %s187_s13  }
  0x19   :  { %179 = dma.done.wait [#allocation3], 256  }
  0x1a   :  { %180 = vsyncadd [#allocation3], 4294967040 }
  0x1b   :  { %181 = dma.done.wait [#allocation6], 256  }
  0x1c   :  { %182 = vsyncadd [#allocation6], 4294967040  ;;  %v40_v0 = vld [vmem:[#allocation2] sm:$0xff]  ;;  %v42_v1 = vld [vmem:[#allocation5] sm:$0xff]  ;;  %vm72_vm4 = vcmask 7168   ;;  %s189_s0 = smov [#allocation7]  }
  0x1d   :  { %v41_v2 = vld [vmem:[#allocation2 + $0x8] sm:$0xff]  ;;  %v44_v3 = vsub.f32 %v40_v0, %v42_v1  ;;  %v43_v4 = vld [vmem:[#allocation5 + $0x8] sm:$0xff]  ;;  %s94_s1 = sshll.u32 %s189_s0, 4  ;;  %vm86_vm5 = vcmask 0   ;;  %s95_s1 = int_to_ptr.vmem [resolvable:$true] %s94_s1 }
  0x1e   :  { %v45_v5 = vsub.f32 %v41_v2, %v43_v4  ;;  %s159_s22 = scalar_lea.vmem %s95_s1, 16  ;;  %s163_s23 = scalar_lea.vmem %s95_s1, 32 }
  0x1f   :  { %v46_v6 = vmul.f32 %v44_v3, %v44_v3  ;;  %p160_p10 = scmp.ne.s32.totalorder %s95_s1, %s159_s22  ;;  %p164_p11 = scmp.lt.s32.totalorder %s95_s1, %s95_s1 }
  0x20   :  { %v47_v7 = vmul.f32 %v45_v5, %v45_v5  ;;  %p165_p12 = scmp.lt.s32.totalorder %s163_s23, %s159_s22 }
  0x21   :  { %48 = vadd.xlane.f32.xlu0 %v46_v6 }
  0x22   :  { %p166_p13 = por %p165_p12, %p164_p11 }
  0x24   :  { %p167_p0 = pnand %p166_p13, %p160_p10 }
  0x25   :  { %50 = vadd.xlane.f32.xlu0 %v47_v7 }
  0xaa   :  { %v49_v8 = vpop.xlane.xlu0 %48 }
  0xab   :  { %111 = vrsqrt.f32 %v49_v8  ;;  %vm54_vm0 = vcmp.eq.f32.partialorder %v49_v8, inf  ;;  %v57_v12 = vand.u32 2147483648, %v49_v8  ;;  %vm56_vm1 = vcmp.eq.f32.partialorder %v49_v8, 0.0 }
  0xae   :  { %v51_v9 = vpop.xlane.xlu0 %50 }
  0xaf   :  { %113 = vrsqrt.f32 %v51_v9  ;;  %vm61_vm2 = vcmp.eq.f32.partialorder %v51_v9, inf  ;;  %v64_v18 = vand.u32 2147483648, %v51_v9  ;;  %vm63_vm3 = vcmp.eq.f32.partialorder %v51_v9, 0.0 }
  0xb8   :  { %v112_v10 = vpop.eup %111 }
  0xb9   :  { %v53_v11 = vmul.f32 %v112_v10, %v49_v8 }
  0xbb   :  { %v55_v13 = vsel %vm54_vm0, %v49_v8, %v53_v11 }
  0xbc   :  { %v114_v14 = vpop.eup %113  ;;  %v58_v15 = vsel %vm56_vm1, %v57_v12, %v55_v13 }
  0xbd   :  { %v66_v16 = vsub.f32 0.0, %v58_v15  ;;  %v60_v17 = vmul.f32 %v114_v14, %v51_v9 }
  0xbf   :  { %v68_v19 = vmul.f32 1.442695, %v66_v16  ;;  %v62_v20 = vsel %vm61_vm2, %v51_v9, %v60_v17 }
  0xc0   :  { %v65_v21 = vsel %vm63_vm3, %v64_v18, %v62_v20 }
  0xc1   :  { %v67_v22 = vsub.f32 0.0, %v65_v21  ;;  %115 = vpow2.f32 %v68_v19 }
  0xc3   :  { %v70_v23 = vmul.f32 1.442695, %v67_v22 }
  0xc5   :  { %117 = vpow2.f32 %v70_v23 }
  0xce   :  { %v116_v24 = vpop.eup %115 }
  0xcf   :  { %v73_v26 = vsel %vm72_vm4, %v116_v24, 0.0 }
  0xd2   :  { %v118_v25 = vpop.eup %117 }
  0xd3   :  { %v74_v27 = vsel %vm72_vm4, %v118_v25, 0.0 }
  0xd4   :  { %v75_v28 = vadd.f32 %v74_v27, %v73_v26 }
  0xd6   :  { %76 = vadd.xlane.f32.xlu1 %v75_v28 }
 0x15f   :  { %v77_v29 = vpop.xlane.xlu1 %76 }
 0x160   :  { %v78_v30 = vrot.slane %v77_v29, 4 }
 0x162   :  { %v79_v31 = vadd.f32 %v78_v30, %v77_v29 }
 0x164   :  { %v80_v32 = vrot.slane %v79_v31, 2 }
 0x166   :  { %v81_v33 = vadd.f32 %v80_v32, %v79_v31 }
 0x168   :  { %v82_v34 = vrot.slane %v81_v33, 1 }
 0x16a   :  { %v83_v35 = vadd.f32 %v82_v34, %v81_v33 }
 0x16c   :  { %104 = vpush %v83_v35 }
 0x19d   :  { %s105_s21 = spop %104 }
 0x19e   :  { %v85_v36 = vstv %s105_s21 }
 0x19f   :  { %87 = vst.msk [vmem:[#allocation7] sm:$0x1] %vm86_vm5, %v85_v36 }
 0x1a0   :  { %170 = shalt.err (!%p167_p0)
}
 0x1a1   :  { %97 = dma.vmem_to_hbm [thread:$0]  %s95_s1, 16, %s216_s2, [#allocation4]  }
 0x1a2   :  { %183 = dma.done.wait [#allocation4], 16  }
 0x1a3   :  { %184 = vsyncadd [#allocation4], 4294967280 }
 0x1a4   :  { %101 = vsyncpa [#allocation3], 1 }
 0x1a5   :  { %102 = vsyncpa [#allocation6], 1 }
 0x1a6   :  { %103 = vsyncpa [#allocation4], 1 }

</bundles_post_ra>
